<compile_context>
chip_gen: v5e
topology: v5e:2x2
jax: 0.10.0
libtpu: 0.0.40
codegen_flags: <defaults>
</compile_context>

<pallas_src>
import numpy as np
import jax
import jax.numpy as jnp
from jax.experimental import pallas as pl
from jax.experimental.pallas import tpu as pltpu

DENSE_SAMPLING_L = 20
GAUSSIAN_SAMPLING_STD = 0.4

_LANE = 128
_SUBLANE = 8
_MAX_TM = 4096
# Total VMEM budget for the kernel's buffers (double-buffered x/out tiles plus
# the double-buffered resident G block), kept under v5e's 16 MiB default
# scoped-VMEM limit so no vmem_limit_bytes override is needed on any chip.
_VMEM_BUDGET_BYTES = 14 * 1024 * 1024
# Kron (block-diagonal) path guards: G must stay small in VMEM and the P-fold
# MXU flop waste must stay far below the memory roofline on all chips.
_MAX_G_PADDED_BYTES = 4 * 1024 * 1024
_MAX_KRON_P = 16


def _round_up(x, m):
    return ((x + m - 1) // m) * m


def _padded_bytes_2d(rows, cols):
    """f32 VMEM footprint of a (rows, cols) tile after (8,128) padding."""
    return 4 * _round_up(rows, _SUBLANE) * _round_up(cols, _LANE)


def _matmul_kernel(x_ref, g_ref, o_ref):
    # Pure MXU contraction: (TM, K) @ (K, N) -> (TM, N), f32 accumulate.
    o_ref[...] = jnp.dot(x_ref[...], g_ref[...],
                         preferred_element_type=jnp.float32)


def _choose_tm(num_rows, k, n):
    """Row-tile size: as large as possible (amortize ~0.35us/step), multiple
    of 8, with the double-buffered padded working set inside the budget."""
    g_bytes = _padded_bytes_2d(k, n)
    avail = max(_VMEM_BUDGET_BYTES - 2 * g_bytes, 2 * 1024 * 1024)
    padded_row_bytes = 4 * (_round_up(k, _LANE) + _round_up(n, _LANE))
    tm = avail // (2 * padded_row_bytes)          # 2x: double buffering
    tm = max(_SUBLANE, min(_MAX_TM, tm))
    tm = (tm // _SUBLANE) * _SUBLANE
    if num_rows <= tm:
        return num_rows  # single full-extent block (always a legal block shape)
    return tm


def _tiled_matmul(x2d, g):
    """out = x2d @ g with a 1-D row-tiled, double-buffered Pallas pipeline."""
    rows, k = x2d.shape
    n = g.shape[1]
    tm = _choose_tm(rows, k, n)
    grid = (pl.cdiv(rows, tm),)
    return pl.pallas_call(
        _matmul_kernel,
        out_shape=jax.ShapeDtypeStruct((rows, n), jnp.float32),
        grid=grid,
        in_specs=[
            # x: one row tile per grid step (contiguous whole rows).
            pl.BlockSpec((tm, k), lambda i: (i, 0)),
            # g: same small block every step -> stays resident in VMEM.
            pl.BlockSpec((k, n), lambda i: (0, 0)),
        ],
        out_specs=pl.BlockSpec((tm, n), lambda i: (i, 0)),
        compiler_params=pltpu.CompilerParams(
            dimension_semantics=("parallel",),  # shard row tiles on v7x megacore
        ),
    )(x2d, g)


def _gaussian_matrix(weight, num_samples_L_tilde):
    """(L, Lt) Gaussian resampling matrix -- computed once in the wrapper."""
    t = jnp.arange(1, DENSE_SAMPLING_L + 1,
                   dtype=jnp.float32).reshape(DENSE_SAMPLING_L, 1)
    w = weight.astype(jnp.float32).reshape(1, num_samples_L_tilde)
    d = t - w
    return jnp.exp(-(d * d) / (GAUSSIAN_SAMPLING_STD ** 2))


def sampling_layer_forward(x, weight, num_of_adc_p, num_samples_L_tilde):
    """x: (B, num_of_adc_p * DENSE_SAMPLING_L) -> (B, num_of_adc_p * Lt)."""
    B = x.shape[0]
    L = DENSE_SAMPLING_L
    P = num_of_adc_p
    Lt = num_samples_L_tilde
    assert x.shape[1] == P * L

    x = x.astype(jnp.float32)
    g_small = _gaussian_matrix(weight, Lt)            # (L, Lt)

    use_kron = (P <= _MAX_KRON_P and
                _padded_bytes_2d(P * L, P * Lt) <= _MAX_G_PADDED_BYTES)
    if use_kron:
        # Lane-dense formulation: out = x @ blockdiag(g,...,g).  Both input
        # and output keep the PyTorch (B, P*L)/(B, P*Lt) row layout, so all
        # DMAs are contiguous whole rows and the last dims are P*L / P*Lt.
        g_big = jnp.kron(jnp.eye(P, dtype=jnp.float32), g_small)  # (P*L, P*Lt)
        return _tiled_matmul(x, g_big)                            # (B, P*Lt)

    # Fallback for very large P: (B, P*L) -> (B*P, L) is a free metadata-only
    # reshape (bit-identical row-major layout); tile over B*P rows with the
    # small G -- no wasted MXU flops, no large G in VMEM.
    out2d = _tiled_matmul(x.reshape(B * P, L), g_small)           # (B*P, Lt)
    return out2d.reshape(B, P * Lt)                               # v*Lt + k layout


def init_sampling_weight(num_samples_L_tilde):
    # Deterministic init exactly as the module's __init__:
    # linspace(0, 20, Lt + 2)[1:-1]
    start = np.linspace(0, DENSE_SAMPLING_L, num_samples_L_tilde + 2,
                        dtype=np.float64)
    return jnp.asarray(start[1:-1], dtype=jnp.float32)


def _reference_forward(x, weight, num_of_adc_p, num_samples_L_tilde):
    # Pure-numpy reference mirroring the PyTorch loops (in float32).
    x = np.asarray(x, np.float32)
    w = np.asarray(weight, np.float32)
    B = x.shape[0]
    L = DENSE_SAMPLING_L
    t = np.arange(1, L + 1, dtype=np.float32)
    out = np.zeros((B, num_samples_L_tilde * num_of_adc_p), np.float32)
    for v, j in enumerate(range(0, L * num_of_adc_p, L)):
        for k in range(num_samples_L_tilde):
            g = np.exp(-(t - w[k]) ** 2 / GAUSSIAN_SAMPLING_STD ** 2)
            out[:, v * num_samples_L_tilde + k] = np.sum(x[:, j:j + L] * g, axis=1)
    return out


if __name__ == "__main__":
    key = jax.random.PRNGKey(0)

    # Case 1: small P -> lane-dense block-diagonal (kron) path.
    B, P, Lt = 2, 3, 5
    k1, k2 = jax.random.split(key)
    x = jax.random.normal(k1, (B, P * DENSE_SAMPLING_L), dtype=jnp.float32)
    weight = init_sampling_weight(Lt)
    out = jax.block_until_ready(sampling_layer_forward(x, weight, P, Lt))
    ref = _reference_forward(np.asarray(x), np.asarray(weight), P, Lt)
    np.testing.assert_allclose(np.asarray(out), ref, rtol=1e-5, atol=1e-5)

    # Case 2: large P -> (B*P, L) fallback path.
    B2, P2, Lt2 = 4, 24, 5
    x2 = jax.random.normal(k2, (B2, P2 * DENSE_SAMPLING_L), dtype=jnp.float32)
    weight2 = init_sampling_weight(Lt2)
    out2 = jax.block_until_ready(sampling_layer_forward(x2, weight2, P2, Lt2))
    ref2 = _reference_forward(np.asarray(x2), np.asarray(weight2), P2, Lt2)
    np.testing.assert_allclose(np.asarray(out2), ref2, rtol=1e-5, atol=1e-5)

    print("KERNEL_OK")
</pallas_src>

<mosaic_0001>
module attributes {stable_mosaic.version = 11 : i64} {
  func.func @_matmul_kernel(%arg0: i32, %arg1: memref<2x60xf32, #tpu.memory_space<vmem>>, %arg2: memref<60x15xf32, #tpu.memory_space<vmem>>, %arg3: memref<2x15xf32, #tpu.memory_space<vmem>>) attributes {dimension_semantics = [#tpu.dimension_semantics<parallel>], iteration_bounds = array<i64: 1>, scalar_prefetch = 0 : i64, scratch_operands = 0 : i64, tpu.core_type = #tpu.core_type<tc>, window_params = [{transform_indices = @transform_0, window_bounds = array<i64: 2, 60>}, {pipeline_mode = #tpu.pipeline_mode<synchronous>, transform_indices = @transform_1, window_bounds = array<i64: 60, 15>}, {transform_indices = @transform_2, window_bounds = array<i64: 2, 15>}]} {
    %c0 = arith.constant 0 : index
    %c0_0 = arith.constant 0 : index
    %0 = vector.load %arg1[%c0, %c0_0] : memref<2x60xf32, #tpu.memory_space<vmem>>, vector<2x60xf32>
    %c0_1 = arith.constant 0 : index
    %c0_2 = arith.constant 0 : index
    %1 = vector.load %arg2[%c0_1, %c0_2] : memref<60x15xf32, #tpu.memory_space<vmem>>, vector<60x15xf32>
    %cst = arith.constant dense<0.000000e+00> : vector<2x15xf32>
    %2 = tpu.matmul %0, %1, %cst {dimension_numbers = #tpu.dot_dimension_numbers<[1], [0], [0], [1], [0, 0, 1, 1], [], []>} : vector<2x60xf32>, vector<60x15xf32>, vector<2x15xf32> -> vector<2x15xf32>
    %c0_3 = arith.constant 0 : index
    %c0_4 = arith.constant 0 : index
    %3 = vector.load %arg3[%c0_3, %c0_4] : memref<2x15xf32, #tpu.memory_space<vmem>>, vector<2x15xf32>
    tpu.vector_store %arg3[%c0_3, %c0_4], %2 {strides = array<i32>} : memref<2x15xf32, #tpu.memory_space<vmem>>, vector<2x15xf32>,
    return
  }
  func.func @transform_0(%arg0: i32) -> (i32, i32) {
    %c0_i32 = arith.constant 0 : i32
    %c0_i32_0 = arith.constant 0 : i32
    return %arg0, %c0_i32 : i32, i32
  }
  func.func @transform_1(%arg0: i32) -> (i32, i32) {
    %c0_i32 = arith.constant 0 : i32
    %c0_i32_0 = arith.constant 0 : i32
    %c0_i32_1 = arith.constant 0 : i32
    return %c0_i32, %c0_i32_0 : i32, i32
  }
  func.func @transform_2(%arg0: i32) -> (i32, i32) {
    %c0_i32 = arith.constant 0 : i32
    %c0_i32_0 = arith.constant 0 : i32
    return %arg0, %c0_i32 : i32, i32
  }
}

</mosaic_0001>

<bundles_post_ra>
// kernel: tpu_custom_call.1
= control target key start
LH: loop header
LB: loop body
LE: loop exit
PB: predicated region body
PF: predicated region fallthrough
CT: control target
= control target key end

     0   :  { %vm25_vm0 = vcmask 1043456   ;;  %s142_s0 = inlined_call_operand.vmem [shape: f32[2,60], index: 0, kind: input, shape index: {}]   ;;  %s143_s1 = inlined_call_operand.vmem [shape: f32[60,15], index: 1, kind: input, shape index: {}]   ;;  %s144_s2 = inlined_call_operand.hbm [shape: f32[2,15], index: 2, kind: output, shape index: {}]  }
   0x1   :  { %v20_v0 = vld [vmem:[%s143_s1 + $0x38] sm:$0xf]  ;;  %v19_v1 = vld [vmem:[%s143_s1 + $0x30] sm:$0xff]  ;;  %v18_v2 = vld [vmem:[%s143_s1 + $0x28] sm:$0xff] }
   0x2   :  { %67 = vmatpush.msk.msra.mxu0 %vm25_vm0, %v20_v0 }
   0x4   :  { %38 = vmatpush.msra.mxu0 %v19_v1 }
   0x5   :  { %7 = vsyncpa [#allocation3], 0  ;;  %v17_v3 = vld [vmem:[%s143_s1 + $0x20] sm:$0xff]  ;;  %v16_v4 = vld [vmem:[%s143_s1 + $0x18] sm:$0xff]  ;;  %vm21_vm1 = vcmask 490496   ;;  %s96_s27 = smov [#allocation2]  }
   0x6   :  { %39 = vmatpush.msra.mxu0 %v18_v2  ;;  %v15_v5 = vld [vmem:[%s143_s1 + $0x10] sm:$0xff]  ;;  %v14_v6 = vld [vmem:[%s143_s1 + $0x8] sm:$0xff]  ;;  %v13_v7 = vld [vmem:[%s143_s1] sm:$0xff]  ;;  %s56_s28 = sshll.u32 %s96_s27, 4  ;;  %s58_s3 = sshll.u32 %s144_s2, 4  ;;  %vm49_vm2 = vcmask 115712   ;;  %s57_s28 = int_to_ptr.vmem [resolvable:$true] %s56_s28  ;;  %s59_s3 = int_to_ptr.hbm [resolvable:$true] %s58_s3 }
   0x7   :  { %v12_v8 = vld [vmem:[%s142_s0] sm:$0x3] }
   0x8   :  { %40 = vmatpush.msra.mxu0 %v17_v3 }
   0xa   :  { %41 = vmatpush.msra.mxu0 %v16_v4 }
   0xc   :  { %42 = vmatpush.msra.mxu0 %v15_v5 }
   0xe   :  { %43 = vmatpush.msra.mxu0 %v14_v6 }
  0x10   :  { %44 = vmatpush.msra.mxu0 %v13_v7 }
  0x11   :  { %68 = vmatmul.msk.f32.vlgmr.msra.gmra.mxu0 %vm21_vm1, %v12_v8 }
  0x8e   :  { %v46_v9 = vpop.f32.mrf.mxu0 }
  0x8f   :  { %50 = vst.msk [vmem:[#allocation2] sm:$0x3] %vm49_vm2, %v46_v9 }
  0x90   :  { %61 = dma.vmem_to_hbm [thread:$0]  %s57_s28, 32, %s59_s3, [#allocation3]  }
  0x91   :  { %94 = dma.done.wait [#allocation3], 32  }
  0x92   :  { %95 = vsyncadd [#allocation3], 4294967264 }
  0x93   :  { %66 = vsyncpa [#allocation3], 1 }

</bundles_post_ra>
